<compile_context>
chip_gen: v7x
topology: tpu7x:2x2x1
jax: 0.10.0
libtpu: 0.0.40
codegen_flags: <defaults>
</compile_context>

<pallas_src>
import functools

import jax
import jax.numpy as jnp
from jax.experimental import pallas as pl
from jax.experimental.pallas import tpu as pltpu


def _round_up(x, m):
    return ((x + m - 1) // m) * m


def encrypter_kernel(msg_ref, key_ref, nonce_ref,
                     w1_ref, b1_ref, w2_ref, b2_ref, w3_ref, b3_ref,
                     o_ref):
    # Layer-1 LHS: pack (msg|key|nonce) along lanes in VMEM (no HBM concat).
    # Concat is done in f32 (native vreg layout), then cast to bf16 so every
    # matmul is a native bf16 x bf16 MXU pass with f32 accumulation.  The lane
    # packing is XLU/VPU work that overlaps the MXU.
    x = jnp.concatenate(
        [msg_ref[...], key_ref[...], nonce_ref[...]], axis=1).astype(jnp.bfloat16)

    # Layer 1: single full-depth (K = 3*size) pass.
    h1 = jnp.dot(x, w1_ref[...], preferred_element_type=jnp.float32) + b1_ref[...]
    h1 = jnp.maximum(h1, 0.0).astype(jnp.bfloat16)

    # Layer 2
    h2 = jnp.dot(h1, w2_ref[...], preferred_element_type=jnp.float32) + b2_ref[...]
    h2 = jnp.maximum(h2, 0.0).astype(jnp.bfloat16)

    # Layer 3 (output columns padded to a multiple of 128 for lane-dense stores)
    out = jnp.dot(h2, w3_ref[...], preferred_element_type=jnp.float32) + b3_ref[...]
    o_ref[...] = out.astype(o_ref.dtype)


def init_params(size, rng_key):
    """Deterministic init mimicking PyTorch nn.Linear default (uniform +-1/sqrt(fan_in)).

    Weights are stored as (in_features, out_features) so y = x @ W + b, which is
    equivalent to PyTorch's x @ W.T with W of shape (out, in).
    """
    dims = [(size * 3, 512), (512, 256), (256, size)]
    params = []
    k = rng_key
    for fan_in, fan_out in dims:
        k, kw, kb = jax.random.split(k, 3)
        bound = 1.0 / jnp.sqrt(fan_in)
        w = jax.random.uniform(kw, (fan_in, fan_out), jnp.float32, -bound, bound)
        b = jax.random.uniform(kb, (1, fan_out), jnp.float32, -bound, bound)
        params += [w, b]
    return tuple(params)


def prepare_params(params, size):
    """One-time repack: cast weights to bf16 (biases stay f32 — added to the f32
    accumulator) and zero-pad W3/b3 output columns to a multiple of 128 lanes."""
    w1, b1, w2, b2, w3, b3 = params
    size_pad = _round_up(size, 128)

    w3p = jnp.zeros((w3.shape[0], size_pad), jnp.float32).at[:, :size].set(w3)
    b3p = jnp.zeros((1, size_pad), jnp.float32).at[:, :size].set(b3)

    return (w1.astype(jnp.bfloat16), b1.astype(jnp.float32),
            w2.astype(jnp.bfloat16), b2.astype(jnp.float32),
            w3p.astype(jnp.bfloat16), b3p.astype(jnp.float32))


@functools.partial(jax.jit, static_argnames=("tb",))
def encrypter_forward(msg, key, nonce, prepared, *, tb=1024):
    """Forward pass. msg/key/nonce: (B, size) f32. Returns (B, size) f32."""
    w1, b1, w2, b2, w3p, b3p = prepared
    B, size = msg.shape
    size_pad = w3p.shape[1]
    k1 = w1.shape[0]  # 3 * size

    # Batch tile:
    #  * large (default 1024 rows) to amortize the ~0.35us per-grid-step overhead,
    #  * capped near B/2 (sublane-aligned) so the "parallel" batch axis yields
    #    >=2 grid steps -> both v7x TCs busy; harmless on v5e/v6e,
    #  * no batch padding: the grid uses cdiv and Pallas clips the last block.
    tb_eff = max(8, min(tb, _round_up(pl.cdiv(B, 2), 8)))
    grid = (pl.cdiv(B, tb_eff),)

    x_spec = pl.BlockSpec((tb_eff, size), lambda i: (i, 0))

    def resident(arr):
        # Full-array block with a constant index_map -> fetched once, stays in VMEM.
        return pl.BlockSpec(arr.shape, lambda i: (0, 0))

    flops = 2 * B * (k1 * 512 + 512 * 256 + 256 * size_pad)
    bytes_accessed = (
        3 * B * size * 4 + B * size_pad * 4                 # f32 activations in/out
        + 2 * (k1 * 512 + 512 * 256 + 256 * size_pad)       # bf16 weights
        + 4 * (512 + 256 + size_pad))                       # f32 biases

    out = pl.pallas_call(
        encrypter_kernel,
        out_shape=jax.ShapeDtypeStruct((B, size_pad), jnp.float32),
        grid=grid,
        in_specs=[x_spec, x_spec, x_spec,
                  resident(w1), resident(b1),
                  resident(w2), resident(b2),
                  resident(w3p), resident(b3p)],
        out_specs=pl.BlockSpec((tb_eff, size_pad), lambda i: (i, 0)),
        compiler_params=pltpu.CompilerParams(
            dimension_semantics=("parallel",)),  # shards batch across v7x's 2 TCs
        cost_estimate=pl.CostEstimate(
            flops=flops, transcendentals=0, bytes_accessed=bytes_accessed),
    )(msg, key, nonce, w1, b1, w2, b2, w3p, b3p)

    # Strip the lane padding (no-op when size is already a multiple of 128).
    return out[:, :size]


def encrypter_ref(msg, key, nonce, params):
    """Pure-JAX f32 reference matching the PyTorch module."""
    w1, b1, w2, b2, w3, b3 = params
    x = jnp.concatenate([msg, key, nonce], axis=1)
    h1 = jnp.maximum(x @ w1 + b1, 0.0)
    h2 = jnp.maximum(h1 @ w2 + b2, 0.0)
    return h2 @ w3 + b3


if __name__ == "__main__":
    size = 64
    batch = 8

    root = jax.random.PRNGKey(0)
    k_params, k_msg, k_key, k_nonce = jax.random.split(root, 4)

    params = init_params(size, k_params)
    prepared = prepare_params(params, size)
    # Reference with bf16-rounded weights (same weight precision as the kernel).
    # Note: the kernel also runs activations through bf16 (deliberate precision
    # downgrade for MXU-native passes); covered by the 1e-2 tolerances.
    params_bf16 = tuple(p.astype(jnp.bfloat16).astype(jnp.float32) for p in params)

    msg = jax.random.normal(k_msg, (batch, size), jnp.float32)
    key = jax.random.normal(k_key, (batch, size), jnp.float32)
    nonce = jax.random.normal(k_nonce, (batch, size), jnp.float32)

    out = jax.block_until_ready(encrypter_forward(msg, key, nonce, prepared))
    assert out.shape == (batch, size)

    ref = encrypter_ref(msg, key, nonce, params_bf16)
    assert jnp.allclose(out, ref, atol=1e-2, rtol=1e-2), "mismatch vs bf16-weight reference"

    # Larger, non-multiple batch: exercises a >1-step grid and the clipped
    # partial last block (no wrapper-side padding anymore).
    km, kk, kn = jax.random.split(jax.random.PRNGKey(1), 3)
    big = 260
    msg_b = jax.random.normal(km, (big, size), jnp.float32)
    key_b = jax.random.normal(kk, (big, size), jnp.float32)
    nonce_b = jax.random.normal(kn, (big, size), jnp.float32)
    out_b = jax.block_until_ready(encrypter_forward(msg_b, key_b, nonce_b, prepared))
    ref_b = encrypter_ref(msg_b, key_b, nonce_b, params_bf16)
    assert out_b.shape == (big, size)
    assert jnp.allclose(out_b, ref_b, atol=1e-2, rtol=1e-2), "mismatch vs reference (grid path)"

    print("KERNEL_OK")
</pallas_src>

<mosaic_0001>
module attributes {stable_mosaic.version = 11 : i64} {
  func.func @encrypter_kernel(%arg0: i32, %arg1: memref<8x64xf32, #tpu.memory_space<vmem>>, %arg2: memref<8x64xf32, #tpu.memory_space<vmem>>, %arg3: memref<8x64xf32, #tpu.memory_space<vmem>>, %arg4: memref<192x512xbf16, #tpu.memory_space<vmem>>, %arg5: memref<1x512xf32, #tpu.memory_space<vmem>>, %arg6: memref<512x256xbf16, #tpu.memory_space<vmem>>, %arg7: memref<1x256xf32, #tpu.memory_space<vmem>>, %arg8: memref<256x128xbf16, #tpu.memory_space<vmem>>, %arg9: memref<1x128xf32, #tpu.memory_space<vmem>>, %arg10: memref<8x128xf32, #tpu.memory_space<vmem>>) attributes {dimension_semantics = [#tpu.dimension_semantics<parallel>], iteration_bounds = array<i64: 1>, scalar_prefetch = 0 : i64, scratch_operands = 0 : i64, tpu.core_type = #tpu.core_type<tc>, window_params = [{transform_indices = @transform_0, window_bounds = array<i64: 8, 64>}, {transform_indices = @transform_1, window_bounds = array<i64: 8, 64>}, {transform_indices = @transform_2, window_bounds = array<i64: 8, 64>}, {pipeline_mode = #tpu.pipeline_mode<synchronous>, transform_indices = @transform_3, window_bounds = array<i64: 192, 512>}, {pipeline_mode = #tpu.pipeline_mode<synchronous>, transform_indices = @transform_4, window_bounds = array<i64: 1, 512>}, {pipeline_mode = #tpu.pipeline_mode<synchronous>, transform_indices = @transform_5, window_bounds = array<i64: 512, 256>}, {pipeline_mode = #tpu.pipeline_mode<synchronous>, transform_indices = @transform_6, window_bounds = array<i64: 1, 256>}, {pipeline_mode = #tpu.pipeline_mode<synchronous>, transform_indices = @transform_7, window_bounds = array<i64: 256, 128>}, {pipeline_mode = #tpu.pipeline_mode<synchronous>, transform_indices = @transform_8, window_bounds = array<i64: 1, 128>}, {transform_indices = @transform_9, window_bounds = array<i64: 8, 128>}]} {
    %c0 = arith.constant 0 : index
    %c0_0 = arith.constant 0 : index
    %0 = vector.load %arg1[%c0, %c0_0] : memref<8x64xf32, #tpu.memory_space<vmem>>, vector<8x64xf32>
    %c0_1 = arith.constant 0 : index
    %c0_2 = arith.constant 0 : index
    %1 = vector.load %arg2[%c0_1, %c0_2] : memref<8x64xf32, #tpu.memory_space<vmem>>, vector<8x64xf32>
    %c0_3 = arith.constant 0 : index
    %c0_4 = arith.constant 0 : index
    %2 = vector.load %arg3[%c0_3, %c0_4] : memref<8x64xf32, #tpu.memory_space<vmem>>, vector<8x64xf32>
    %3 = tpu.concatenate %0, %1, %2 in 1 : vector<8x64xf32>, vector<8x64xf32>, vector<8x64xf32> -> vector<8x192xf32>
    %4 = arith.truncf %3 : vector<8x192xf32> to vector<8x192xbf16>
    %c0_5 = arith.constant 0 : index
    %c0_6 = arith.constant 0 : index
    %5 = vector.load %arg4[%c0_5, %c0_6] : memref<192x512xbf16, #tpu.memory_space<vmem>>, vector<192x512xbf16>
    %cst = arith.constant dense<0.000000e+00> : vector<8x512xf32>
    %6 = tpu.matmul %4, %5, %cst {dimension_numbers = #tpu.dot_dimension_numbers<[1], [0], [0], [1], [0, 0, 1, 1], [], []>} : vector<8x192xbf16>, vector<192x512xbf16>, vector<8x512xf32> -> vector<8x512xf32>
    %c0_7 = arith.constant 0 : index
    %c0_8 = arith.constant 0 : index
    %7 = vector.load %arg5[%c0_7, %c0_8] : memref<1x512xf32, #tpu.memory_space<vmem>>, vector<1x512xf32>
    %8 = vector.broadcast %7 : vector<1x512xf32> to vector<8x512xf32>
    %9 = arith.addf %6, %8 : vector<8x512xf32>
    %cst_9 = arith.constant 0.000000e+00 : f32
    %10 = vector.broadcast %cst_9 : f32 to vector<8x512xf32>
    %11 = arith.maximumf %9, %10 : vector<8x512xf32>
    %12 = arith.truncf %11 : vector<8x512xf32> to vector<8x512xbf16>
    %c0_10 = arith.constant 0 : index
    %c0_11 = arith.constant 0 : index
    %13 = vector.load %arg6[%c0_10, %c0_11] : memref<512x256xbf16, #tpu.memory_space<vmem>>, vector<512x256xbf16>
    %cst_12 = arith.constant dense<0.000000e+00> : vector<8x256xf32>
    %14 = tpu.matmul %12, %13, %cst_12 {dimension_numbers = #tpu.dot_dimension_numbers<[1], [0], [0], [1], [0, 0, 1, 1], [], []>} : vector<8x512xbf16>, vector<512x256xbf16>, vector<8x256xf32> -> vector<8x256xf32>
    %c0_13 = arith.constant 0 : index
    %c0_14 = arith.constant 0 : index
    %15 = vector.load %arg7[%c0_13, %c0_14] : memref<1x256xf32, #tpu.memory_space<vmem>>, vector<1x256xf32>
    %16 = vector.broadcast %15 : vector<1x256xf32> to vector<8x256xf32>
    %17 = arith.addf %14, %16 : vector<8x256xf32>
    %cst_15 = arith.constant 0.000000e+00 : f32
    %18 = vector.broadcast %cst_15 : f32 to vector<8x256xf32>
    %19 = arith.maximumf %17, %18 : vector<8x256xf32>
    %20 = arith.truncf %19 : vector<8x256xf32> to vector<8x256xbf16>
    %c0_16 = arith.constant 0 : index
    %c0_17 = arith.constant 0 : index
    %21 = vector.load %arg8[%c0_16, %c0_17] : memref<256x128xbf16, #tpu.memory_space<vmem>>, vector<256x128xbf16>
    %cst_18 = arith.constant dense<0.000000e+00> : vector<8x128xf32>
    %22 = tpu.matmul %20, %21, %cst_18 {dimension_numbers = #tpu.dot_dimension_numbers<[1], [0], [0], [1], [0, 0, 1, 1], [], []>} : vector<8x256xbf16>, vector<256x128xbf16>, vector<8x128xf32> -> vector<8x128xf32>
    %c0_19 = arith.constant 0 : index
    %c0_20 = arith.constant 0 : index
    %23 = vector.load %arg9[%c0_19, %c0_20] : memref<1x128xf32, #tpu.memory_space<vmem>>, vector<1x128xf32>
    %24 = vector.broadcast %23 : vector<1x128xf32> to vector<8x128xf32>
    %25 = arith.addf %22, %24 : vector<8x128xf32>
    %c0_21 = arith.constant 0 : index
    %c0_22 = arith.constant 0 : index
    %26 = vector.load %arg10[%c0_21, %c0_22] : memref<8x128xf32, #tpu.memory_space<vmem>>, vector<8x128xf32>
    tpu.vector_store %arg10[%c0_21, %c0_22], %25 {strides = array<i32>} : memref<8x128xf32, #tpu.memory_space<vmem>>, vector<8x128xf32>,
    return
  }
  func.func @transform_0(%arg0: i32) -> (i32, i32) {
    %c0_i32 = arith.constant 0 : i32
    %c0_i32_0 = arith.constant 0 : i32
    return %arg0, %c0_i32 : i32, i32
  }
  func.func @transform_1(%arg0: i32) -> (i32, i32) {
    %c0_i32 = arith.constant 0 : i32
    %c0_i32_0 = arith.constant 0 : i32
    return %arg0, %c0_i32 : i32, i32
  }
  func.func @transform_2(%arg0: i32) -> (i32, i32) {
    %c0_i32 = arith.constant 0 : i32
    %c0_i32_0 = arith.constant 0 : i32
    return %arg0, %c0_i32 : i32, i32
  }
  func.func @transform_3(%arg0: i32) -> (i32, i32) {
    %c0_i32 = arith.constant 0 : i32
    %c0_i32_0 = arith.constant 0 : i32
    %c0_i32_1 = arith.constant 0 : i32
    return %c0_i32, %c0_i32_0 : i32, i32
  }
  func.func @transform_4(%arg0: i32) -> (i32, i32) {
    %c0_i32 = arith.constant 0 : i32
    %c0_i32_0 = arith.constant 0 : i32
    %c0_i32_1 = arith.constant 0 : i32
    return %c0_i32, %c0_i32_0 : i32, i32
  }
  func.func @transform_5(%arg0: i32) -> (i32, i32) {
    %c0_i32 = arith.constant 0 : i32
    %c0_i32_0 = arith.constant 0 : i32
    %c0_i32_1 = arith.constant 0 : i32
    return %c0_i32, %c0_i32_0 : i32, i32
  }
  func.func @transform_6(%arg0: i32) -> (i32, i32) {
    %c0_i32 = arith.constant 0 : i32
    %c0_i32_0 = arith.constant 0 : i32
    %c0_i32_1 = arith.constant 0 : i32
    return %c0_i32, %c0_i32_0 : i32, i32
  }
  func.func @transform_7(%arg0: i32) -> (i32, i32) {
    %c0_i32 = arith.constant 0 : i32
    %c0_i32_0 = arith.constant 0 : i32
    %c0_i32_1 = arith.constant 0 : i32
    return %c0_i32, %c0_i32_0 : i32, i32
  }
  func.func @transform_8(%arg0: i32) -> (i32, i32) {
    %c0_i32 = arith.constant 0 : i32
    %c0_i32_0 = arith.constant 0 : i32
    %c0_i32_1 = arith.constant 0 : i32
    return %c0_i32, %c0_i32_0 : i32, i32
  }
  func.func @transform_9(%arg0: i32) -> (i32, i32) {
    %c0_i32 = arith.constant 0 : i32
    %c0_i32_0 = arith.constant 0 : i32
    return %arg0, %c0_i32 : i32, i32
  }
}

</mosaic_0001>

<bundles_post_ra>
// kernel: encrypter_forward.1
= control target key start
LH: loop header
LB: loop body
LE: loop exit
PB: predicated region body
PF: predicated region fallthrough
CT: control target
= control target key end

     0   :  { %14 = vsyncpa [#allocation3], 0  ;;  %s1910_s0 = inlined_call_operand.hbm [shape: f32[8,64], index: 0, kind: input, shape index: {}]   ;;  %s1911_s1 = inlined_call_operand.hbm [shape: f32[8,64], index: 1, kind: input, shape index: {}]   ;;  %s1912_s2 = inlined_call_operand.hbm [shape: f32[8,64], index: 2, kind: input, shape index: {}]   ;;  %s1913_s3 = inlined_call_operand.hbm [shape: bf16[192,512], index: 3, kind: input, shape index: {}]   ;;  %s1914_s4 = inlined_call_operand.vmem [shape: f32[1,512], index: 4, kind: input, shape index: {}]   ;;  %s1915_s5 = inlined_call_operand.hbm [shape: bf16[512,256], index: 5, kind: input, shape index: {}]   ;;  %s1916_s6 = inlined_call_operand.vmem [shape: f32[1,256], index: 6, kind: input, shape index: {}]   ;;  %s1917_s7 = inlined_call_operand.hbm [shape: bf16[256,128], index: 7, kind: input, shape index: {}]   ;;  %s1918_s8 = inlined_call_operand.vmem [shape: f32[1,128], index: 8, kind: input, shape index: {}]   ;;  %s1919_s9 = inlined_call_operand.hbm [shape: f32[8,128], index: 9, kind: output, shape index: {}]  }
   0x1   :  { %15 = vsyncpa [#allocation6], 0 }
   0x2   :  { %16 = vsyncpa [#allocation9], 0 }
   0x3   :  { %17 = vsyncpa [#allocation12], 0 }
   0x4   :  { %18 = vsyncpa [#allocation4], 0  ;;  %s1720_s30 = smov [#allocation5]   ;;  %s1721_s11 = smov [#allocation8]  }
   0x5   :  { %s35_s10 = sshll.u32 %s1720_s30, 4  ;;  %s54_s12 = sshll.u32 %s1721_s11, 4  ;;  %s36_s10 = int_to_ptr.vmem [resolvable:$true] %s35_s10  ;;  %s1783_s12 = int_to_ptr.vmem [resolvable:$true] %s54_s12 }
   0x6   :  { %s1556_s15 = scalar_lea.hbm %s1911_s1, 128 }
   0x7   :  { %p1557_p0 = scmp.ne.s32.totalorder %s1911_s1, %s1556_s15  ;;  %p1560_p1 = scmp.lt.u32.totalorder %s1556_s15, %s1911_s1 }
   0x9   :  { %p1562_p2 = pnand %p1560_p1, %p1557_p0 }
   0xb   :  { %1565 = shalt.err (!%p1562_p2)
}
   0xc   :  { %s1566_s20 = scalar_lea.vmem %s36_s10, 128  ;;  %p1571_p4 = scmp.lt.s32.totalorder %s36_s10, %s36_s10 }
   0xd   :  { %p1567_p3 = scmp.ne.s32.totalorder %s36_s10, %s1566_s20  ;;  %p1572_p5 = scmp.lt.s32.totalorder %s1566_s20, %s1566_s20 }
   0xf   :  { %p1573_p6 = por %p1572_p5, %p1571_p4 }
  0x11   :  { %p1574_p7 = pnand %p1573_p6, %p1567_p3 }
  0x13   :  { %1577 = shalt.err (!%p1574_p7)
}
  0x14   :  { %38 = dma.hbm_to_vmem [thread:$0]  %s1911_s1, 128, %s36_s10, [#allocation6]  }
  0x15   :  { %s1578_s25 = scalar_lea.hbm %s1913_s3, 6144 }
  0x16   :  { %p1579_p8 = scmp.ne.s32.totalorder %s1913_s3, %s1578_s25  ;;  %p1582_p9 = scmp.lt.u32.totalorder %s1578_s25, %s1913_s3 }
  0x18   :  { %p1584_p10 = pnand %p1582_p9, %p1579_p8 }
  0x1a   :  { %1587 = shalt.err (!%p1584_p10)
}
  0x1b   :  { %s1588_s30 = scalar_lea.vmem %s1783_s12, 6144  ;;  %p1593_p12 = scmp.lt.s32.totalorder %s1783_s12, %s1783_s12 }
  0x1c   :  { %p1589_p11 = scmp.ne.s32.totalorder %s1783_s12, %s1588_s30  ;;  %p1594_p13 = scmp.lt.s32.totalorder %s1588_s30, %s1588_s30 }
  0x1e   :  { %p1595_p0 = por %p1594_p13, %p1593_p12 }
  0x20   :  { %p1596_p1 = pnand %p1595_p0, %p1589_p11 }
  0x22   :  { %1599 = shalt.err (!%p1596_p1)
}
  0x23   :  { %s1722_s1 = smov 256   ;;  %s1723_s10 = smov 16  }
  0x24   :  { %60 = dma.hbm_to_vmem [thread:$0]  %s1913_s3, 6144, %s1783_s12, [#allocation9], %s1722_s1, %s1722_s1, %s1723_s10  }
  0x25   :  { %s1724_s14 = smov [#allocation2]   ;;  %s1725_s16 = smov [#allocation7]  }
  0x26   :  { %s25_s15 = sshll.u32 %s1724_s14, 4  ;;  %s45_s17 = sshll.u32 %s1725_s16, 4  ;;  %s26_s15 = int_to_ptr.vmem [resolvable:$true] %s25_s15  ;;  %s46_s17 = int_to_ptr.vmem [resolvable:$true] %s45_s17 }
  0x27   :  { %s1600_s20 = scalar_lea.hbm %s1910_s0, 128 }
  0x28   :  { %p1601_p2 = scmp.ne.s32.totalorder %s1910_s0, %s1600_s20  ;;  %p1604_p3 = scmp.lt.u32.totalorder %s1600_s20, %s1910_s0 }
  0x2a   :  { %p1606_p4 = pnand %p1604_p3, %p1601_p2 }
  0x2c   :  { %1609 = shalt.err (!%p1606_p4)
}
  0x2d   :  { %s1610_s3 = scalar_lea.vmem %s26_s15, 128  ;;  %p1615_p6 = scmp.lt.s32.totalorder %s26_s15, %s26_s15 }
  0x2e   :  { %p1611_p5 = scmp.ne.s32.totalorder %s26_s15, %s1610_s3  ;;  %p1616_p7 = scmp.lt.s32.totalorder %s1610_s3, %s1610_s3 }
  0x30   :  { %p1617_p8 = por %p1616_p7, %p1615_p6 }
  0x32   :  { %p1618_p9 = pnand %p1617_p8, %p1611_p5 }
  0x34   :  { %1621 = shalt.err (!%p1618_p9)
}
  0x35   :  { %28 = dma.hbm_to_vmem [thread:$0]  %s1910_s0, 128, %s26_s15, [#allocation3]  }
  0x36   :  { %s1622_s28 = scalar_lea.hbm %s1912_s2, 128 }
  0x37   :  { %p1623_p10 = scmp.ne.s32.totalorder %s1912_s2, %s1622_s28  ;;  %p1626_p11 = scmp.lt.u32.totalorder %s1622_s28, %s1912_s2 }
  0x39   :  { %p1628_p12 = pnand %p1626_p11, %p1623_p10 }
  0x3b   :  { %1631 = shalt.err (!%p1628_p12)
}
  0x3c   :  { %s1632_s11 = scalar_lea.vmem %s46_s17, 128  ;;  %p1637_p0 = scmp.lt.s32.totalorder %s46_s17, %s46_s17 }
  0x3d   :  { %p1633_p13 = scmp.ne.s32.totalorder %s46_s17, %s1632_s11  ;;  %p1638_p1 = scmp.lt.s32.totalorder %s1632_s11, %s1632_s11 }
  0x3f   :  { %p1639_p2 = por %p1638_p1, %p1637_p0 }
  0x41   :  { %p1640_p3 = pnand %p1639_p2, %p1633_p13 }
  0x43   :  { %1643 = shalt.err (!%p1640_p3)
}
  0x44   :  { %48 = dma.hbm_to_vmem [thread:$0]  %s1912_s2, 128, %s46_s17, [#allocation6]  }
  0x45   :  { %s1726_s14 = smov [#allocation10]   ;;  %s1644_s19 = scalar_lea.hbm %s1915_s5, 8192 }
  0x46   :  { %s68_s15 = sshll.u32 %s1726_s14, 4  ;;  %p1645_p4 = scmp.ne.s32.totalorder %s1915_s5, %s1644_s19  ;;  %s69_s15 = int_to_ptr.vmem [resolvable:$true] %s68_s15 }
  0x47   :  { %p1648_p5 = scmp.lt.u32.totalorder %s1644_s19, %s1915_s5 }
  0x49   :  { %p1650_p6 = pnand %p1648_p5, %p1645_p4 }
  0x4b   :  { %1653 = shalt.err (!%p1650_p6)
}
  0x4c   :  { %s1654_s24 = scalar_lea.vmem %s69_s15, 8192  ;;  %p1659_p8 = scmp.lt.s32.totalorder %s69_s15, %s69_s15 }
  0x4d   :  { %p1655_p7 = scmp.ne.s32.totalorder %s69_s15, %s1654_s24  ;;  %p1660_p9 = scmp.lt.s32.totalorder %s1654_s24, %s1654_s24 }
  0x4f   :  { %p1661_p10 = por %p1660_p9, %p1659_p8 }
  0x51   :  { %p1662_p11 = pnand %p1661_p10, %p1655_p7 }
  0x53   :  { %1665 = shalt.err (!%p1662_p11)
}
  0x54   :  { %s1727_s2 = smov 128   ;;  %s1728_s17 = smov 8  }
  0x55   :  { %74 = dma.hbm_to_vmem [thread:$0]  %s1915_s5, 8192, %s69_s15, [#allocation9], %s1727_s2, %s1727_s2, %s1728_s17  }
  0x56   :  { %s1729_s25 = smov [#allocation11]   ;;  %s1666_s29 = scalar_lea.hbm %s1917_s7, 2048 }
  0x57   :  { %s82_s26 = sshll.u32 %s1729_s25, 4  ;;  %p1667_p12 = scmp.ne.s32.totalorder %s1917_s7, %s1666_s29  ;;  %s83_s26 = int_to_ptr.vmem [resolvable:$true] %s82_s26 }
  0x58   :  { %p1670_p13 = scmp.lt.u32.totalorder %s1666_s29, %s1917_s7 }
  0x5a   :  { %p1672_p0 = pnand %p1670_p13, %p1667_p12 }
  0x5c   :  { %1675 = shalt.err (!%p1672_p0)
}
  0x5d   :  { %s1676_s0 = scalar_lea.vmem %s83_s26, 2048  ;;  %p1681_p2 = scmp.lt.s32.totalorder %s83_s26, %s83_s26 }
  0x5e   :  { %p1677_p1 = scmp.ne.s32.totalorder %s83_s26, %s1676_s0  ;;  %p1682_p3 = scmp.lt.s32.totalorder %s1676_s0, %s1676_s0 }
  0x60   :  { %p1683_p4 = por %p1682_p3, %p1681_p2 }
  0x62   :  { %p1684_p5 = pnand %p1683_p4, %p1677_p1 }
  0x64   :  { %1687 = shalt.err (!%p1684_p5)
}
  0x65   :  { %s1730_s5 = smov 64   ;;  %s1731_s13 = smov 4  }
  0x66   :  { %88 = dma.hbm_to_vmem [thread:$0]  %s1917_s7, 2048, %s83_s26, [#allocation12], %s1730_s5, %s1730_s5, %s1731_s13  }
  0x67   :  { %1710 = dma.done.wait [#allocation3], 128  }
  0x68   :  { %1711 = vsyncadd [#allocation3], 4294967168 }
  0x69   :  { %1712 = dma.done.wait [#allocation6], 256  }
  0x6a   :  { %1713 = vsyncadd [#allocation6], 4294967040 }
  0x6b   :  { %1714 = dma.done.wait [#allocation9], 14336  }
  0x6c   :  { %1715 = vsyncadd [#allocation9], 4294952960 }
  0x6d   :  { %1716 = dma.done.wait [#allocation12], 2048  }
  0x6e   :  { %1717 = vsyncadd [#allocation12], 4294965248  ;;  %v111_v0 = vld [vmem:[#allocation5] sm:$0xff]  ;;  %v112_v11 = vld [vmem:[#allocation7] sm:$0xff]  ;;  %vm117_vm0 = vcmask 523264   ;;  %s1732_s20 = smov [#allocation13]  }
  0x6f   :  { %114 = vrot.lane.b32.xlu0 %v111_v0, %s1730_s5  ;;  %v1372_v1 = vld [vmem:[#allocation8 + $0x4] ss:$16 sps:$4 sm:$0xff]   ;;  %v1374_v2 = vld [vmem:[#allocation8] ss:$16 sps:$4 sm:$0xff]   ;;  %v1862_v13 = vpack.c.bf16 %v112_v11, %v112_v11  ;;  %v1410_v32 = vld [vmem:[#allocation8 + $0xc] ss:$16 sps:$4 sm:$0xff]  }
  0x70   :  { %v1375_v3 = vld [vmem:[#allocation8 + $0x24] ss:$16 sps:$4 sm:$0xff]   ;;  %434 = vmatprep.subr.bf16.mxu1 %v1372_v1  ;;  %v1377_v4 = vld [vmem:[#allocation8 + $0x20] ss:$16 sps:$4 sm:$0xff]   ;;  %v110_v56 = vld [vmem:[#allocation2] sm:$0xff]  ;;  %s1188_s21 = sshll.u32 %s1732_s20, 4  ;;  %s1189_s21 = int_to_ptr.vmem [resolvable:$true] %s1188_s21 }
  0x71   :  { %435 = vmatpush1.bf16.msra.mxu1 %v1374_v2  ;;  %v1378_v5 = vld [vmem:[#allocation8 + $0x44] ss:$16 sps:$4 sm:$0xff]   ;;  %v1380_v6 = vld [vmem:[#allocation8 + $0x40] ss:$16 sps:$4 sm:$0xff]   ;;  %1248 = vmatprep.mubr.msk.bf16.mxu1 %vm117_vm0, %v1862_v13  ;;  %v1408_v59 = vld [vmem:[#allocation8 + $0x8] ss:$16 sps:$4 sm:$0xff]   ;;  %p1693_p7 = scmp.lt.s32.totalorder %s1189_s21, %s1189_s21 }
  0x72   :  { %436 = vmatprep.subr.bf16.mxu1 %v1375_v3  ;;  %v1381_v7 = vld [vmem:[#allocation8 + $0x64] ss:$16 sps:$4 sm:$0xff]   ;;  %v1383_v8 = vld [vmem:[#allocation8 + $0x60] ss:$16 sps:$4 sm:$0xff]   ;;  %v1413_v61 = vld [vmem:[#allocation8 + $0x2c] ss:$16 sps:$4 sm:$0xff]  }
  0x73   :  { %v1384_v9 = vld [vmem:[#allocation8 + $0x84] ss:$16 sps:$4 sm:$0xff]   ;;  %v1386_v10 = vld [vmem:[#allocation8 + $0x80] ss:$16 sps:$4 sm:$0xff]   ;;  %v1411_v62 = vld [vmem:[#allocation8 + $0x28] ss:$16 sps:$4 sm:$0xff]  }
  0x74   :  { %v1387_v12 = vld [vmem:[#allocation8 + $0xa4] ss:$16 sps:$4 sm:$0xff]   ;;  %v1389_v14 = vld [vmem:[#allocation8 + $0xa0] ss:$16 sps:$4 sm:$0xff]   ;;  %v1416_v63 = vld [vmem:[#allocation8 + $0x4c] ss:$16 sps:$4 sm:$0xff]  }
  0x75   :  { %437 = vmatpush1.bf16.msra.mxu1 %v1377_v4  ;;  %v1390_v15 = vld [vmem:[#allocation8 + $0xc4] ss:$16 sps:$4 sm:$0xff]   ;;  %v1392_v16 = vld [vmem:[#allocation8 + $0xc0] ss:$16 sps:$4 sm:$0xff]   ;;  %v1414_v0 = vld [vmem:[#allocation8 + $0x48] ss:$16 sps:$4 sm:$0xff]  }
  0x76   :  { %438 = vmatprep.subr.bf16.mxu1 %v1378_v5  ;;  %v1393_v17 = vld [vmem:[#allocation8 + $0xe4] ss:$16 sps:$4 sm:$0xff]   ;;  %v1395_v18 = vld [vmem:[#allocation8 + $0xe0] ss:$16 sps:$4 sm:$0xff]   ;;  %v1419_v1 = vld [vmem:[#allocation8 + $0x6c] ss:$16 sps:$4 sm:$0xff]  }
  0x77   :  { %v1396_v19 = vld [vmem:[#allocation8 + $0x104] ss:$16 sps:$4 sm:$0xff]   ;;  %v1398_v20 = vld [vmem:[#allocation8 + $0x100] ss:$16 sps:$4 sm:$0xff]   ;;  %v1417_v2 = vld [vmem:[#allocation8 + $0x68] ss:$16 sps:$4 sm:$0xff]  }
  0x78   :  { %v1399_v21 = vld [vmem:[#allocation8 + $0x124] ss:$16 sps:$4 sm:$0xff]   ;;  %v1401_v22 = vld [vmem:[#allocation8 + $0x120] ss:$16 sps:$4 sm:$0xff]   ;;  %v1422_v3 = vld [vmem:[#allocation8 + $0x8c] ss:$16 sps:$4 sm:$0xff]  }
  0x79   :  { %439 = vmatpush1.bf16.msra.mxu1 %v1380_v6  ;;  %v1402_v23 = vld [vmem:[#allocation8 + $0x144] ss:$16 sps:$4 sm:$0xff]   ;;  %v1446_v25 = vld [vmem:[#allocation10] ss:$8 sps:$4 sm:$0xff]   ;;  %v1449_v29 = vld [vmem:[#allocation10 + $0x10] ss:$8 sps:$4 sm:$0xff]  }
  0x7a   :  { %440 = vmatprep.subr.bf16.mxu1 %v1381_v7  ;;  %v1444_v24 = vld [vmem:[#allocation10 + $0x4] ss:$8 sps:$4 sm:$0xff]   ;;  %v1447_v26 = vld [vmem:[#allocation10 + $0x14] ss:$8 sps:$4 sm:$0xff]   ;;  %v1404_v27 = vld [vmem:[#allocation8 + $0x140] ss:$16 sps:$4 sm:$0xff]  }
  0x7b   :  { %v1405_v28 = vld [vmem:[#allocation8 + $0x164] ss:$16 sps:$4 sm:$0xff]   ;;  %920 = vmatprep.subr.bf16.mxu0 %v1444_v24  ;;  %v1407_v31 = vld [vmem:[#allocation8 + $0x160] ss:$16 sps:$4 sm:$0xff]   ;;  %v1420_v4 = vld [vmem:[#allocation8 + $0x88] ss:$16 sps:$4 sm:$0xff]  }
  0x7c   :  { %921 = vmatpush1.bf16.msra.mxu0 %v1446_v25  ;;  %v1450_v30 = vld [vmem:[#allocation10 + $0x24] ss:$8 sps:$4 sm:$0xff]   ;;  %v1452_v33 = vld [vmem:[#allocation10 + $0x20] ss:$8 sps:$4 sm:$0xff]   ;;  %v1453_v34 = vld [vmem:[#allocation10 + $0x34] ss:$8 sps:$4 sm:$0xff]  }
  0x7d   :  { %441 = vmatpush1.bf16.msra.mxu1 %v1383_v8  ;;  %922 = vmatprep.subr.bf16.mxu0 %v1447_v26  ;;  %v1455_v35 = vld [vmem:[#allocation10 + $0x30] ss:$8 sps:$4 sm:$0xff]   ;;  %v1456_v36 = vld [vmem:[#allocation10 + $0x44] ss:$8 sps:$4 sm:$0xff]   ;;  %v1458_v37 = vld [vmem:[#allocation10 + $0x40] ss:$8 sps:$4 sm:$0xff]  }
  0x7e   :  { %442 = vmatprep.subr.bf16.mxu1 %v1384_v9  ;;  %v1459_v38 = vld [vmem:[#allocation10 + $0x54] ss:$8 sps:$4 sm:$0xff]   ;;  %v1461_v39 = vld [vmem:[#allocation10 + $0x50] ss:$8 sps:$4 sm:$0xff]   ;;  %v1462_v40 = vld [vmem:[#allocation10 + $0x64] ss:$8 sps:$4 sm:$0xff]  }
  0x7f   :  { %v1464_v41 = vld [vmem:[#allocation10 + $0x60] ss:$8 sps:$4 sm:$0xff]   ;;  %v1465_v42 = vld [vmem:[#allocation10 + $0x74] ss:$8 sps:$4 sm:$0xff]   ;;  %v1467_v43 = vld [vmem:[#allocation10 + $0x70] ss:$8 sps:$4 sm:$0xff]  }
  0x80   :  { %923 = vmatpush1.bf16.msra.mxu0 %v1449_v29  ;;  %v1468_v44 = vld [vmem:[#allocation10 + $0x84] ss:$8 sps:$4 sm:$0xff]   ;;  %v1470_v45 = vld [vmem:[#allocation10 + $0x80] ss:$8 sps:$4 sm:$0xff]   ;;  %v1471_v46 = vld [vmem:[#allocation10 + $0x94] ss:$8 sps:$4 sm:$0xff]  }
  0x81   :  { %443 = vmatpush1.bf16.msra.mxu1 %v1386_v10  ;;  %924 = vmatprep.subr.bf16.mxu0 %v1450_v30  ;;  %v1473_v47 = vld [vmem:[#allocation10 + $0x90] ss:$8 sps:$4 sm:$0xff]   ;;  %v1474_v48 = vld [vmem:[#allocation10 + $0xa4] ss:$8 sps:$4 sm:$0xff]   ;;  %v1476_v49 = vld [vmem:[#allocation10 + $0xa0] ss:$8 sps:$4 sm:$0xff]  }
  0x82   :  { %444 = vmatprep.subr.bf16.mxu1 %v1387_v12  ;;  %v1477_v50 = vld [vmem:[#allocation10 + $0xb4] ss:$8 sps:$4 sm:$0xff]   ;;  %v1479_v51 = vld [vmem:[#allocation10 + $0xb0] ss:$8 sps:$4 sm:$0xff]   ;;  %v1480_v52 = vld [vmem:[#allocation10 + $0xc4] ss:$8 sps:$4 sm:$0xff]  }
  0x83   :  { %v1482_v53 = vld [vmem:[#allocation10 + $0xc0] ss:$8 sps:$4 sm:$0xff]   ;;  %v1483_v54 = vld [vmem:[#allocation10 + $0xd4] ss:$8 sps:$4 sm:$0xff]   ;;  %v1485_v55 = vld [vmem:[#allocation10 + $0xd0] ss:$8 sps:$4 sm:$0xff]  }
  0x84   :  { %925 = vmatpush1.bf16.msra.mxu0 %v1452_v33  ;;  %v1425_v5 = vld [vmem:[#allocation8 + $0xac] ss:$16 sps:$4 sm:$0xff]   ;;  %v1423_v6 = vld [vmem:[#allocation8 + $0xa8] ss:$16 sps:$4 sm:$0xff]   ;;  %v1540_v24 = vld [vmem:[#allocation11 + $0x40] sm:$0xff]   ;;  %s1688_s22 = scalar_lea.vmem %s1189_s21, 128 }
  0x85   :  { %445 = vmatpush1.bf16.msra.mxu1 %v1389_v14  ;;  %926 = vmatprep.subr.bf16.mxu0 %v1453_v34  ;;  %v1428_v7 = vld [vmem:[#allocation8 + $0xcc] ss:$16 sps:$4 sm:$0xff]   ;;  %v1426_v8 = vld [vmem:[#allocation8 + $0xc8] ss:$16 sps:$4 sm:$0xff]   ;;  %v1541_v25 = vld [vmem:[#allocation11] sm:$0xff]   ;;  %p1689_p6 = scmp.ne.s32.totalorder %s1189_s21, %s1688_s22  ;;  %p1694_p8 = scmp.lt.s32.totalorder %s1688_s22, %s1688_s22 }
  0x86   :  { %446 = vmatprep.subr.bf16.mxu1 %v1390_v15  ;;  %v1431_v9 = vld [vmem:[#allocation8 + $0xec] ss:$16 sps:$4 sm:$0xff]   ;;  %v1429_v10 = vld [vmem:[#allocation8 + $0xe8] ss:$16 sps:$4 sm:$0xff]   ;;  %v1545_v29 = vld [vmem:[#allocation11 + $0x10] sm:$0xff]  }
  0x87   :  { %v1434_v11 = vld [vmem:[#allocation8 + $0x10c] ss:$16 sps:$4 sm:$0xff]   ;;  %v1432_v12 = vld [vmem:[#allocation8 + $0x108] ss:$16 sps:$4 sm:$0xff]   ;;  %v1549_v33 = vld [vmem:[#allocation11 + $0x20] sm:$0xff]   ;;  %p1695_p9 = por %p1694_p8, %p1693_p7 }
  0x88   :  { %927 = vmatpush1.bf16.msra.mxu0 %v1455_v35  ;;  %v1435_v14 = vld [vmem:[#allocation8 + $0x128] ss:$16 sps:$4 sm:$0xff]   ;;  %v1440_v15 = vld [vmem:[#allocation8 + $0x14c] ss:$16 sps:$4 sm:$0xff]  }
  0x89   :  { %447 = vmatpush1.bf16.msra.mxu1 %v1392_v16  ;;  %928 = vmatprep.subr.bf16.mxu0 %v1456_v36  ;;  %v1438_v16 = vld [vmem:[#allocation8 + $0x148] ss:$16 sps:$4 sm:$0xff]   ;;  %v171_v36 = vlaneseq  ;;  %p1696_p10 = pnand %p1695_p9, %p1689_p6 }
  0x8a   :  { %448 = vmatprep.subr.bf16.mxu1 %v1393_v17  ;;  %v1443_v17 = vld [vmem:[#allocation8 + $0x16c] ss:$16 sps:$4 sm:$0xff]  }
  0x8b   :  { %v1542_v26 = vld [vmem:[#allocation11 + $0x48] sm:$0xff]   ;;  %v1546_v30 = vld [vmem:[#allocation11 + $0x58] sm:$0xff]  }
  0x8c   :  { %929 = vmatpush1.bf16.msra.mxu0 %v1458_v37  ;;  %v1550_v34 = vld [vmem:[#allocation11 + $0x68] sm:$0xff]   ;;  %v1869_v37 = vshrl.u32 %v171_v36, 7  ;;  %v1554_v36 = vld [vmem:[#allocation11 + $0x78] sm:$0xff]  }
  0x8d   :  { %449 = vmatpush1.bf16.msra.mxu1 %v1395_v18  ;;  %930 = vmatprep.subr.bf16.mxu0 %v1459_v38  ;;  %v1441_v18 = vld [vmem:[#allocation8 + $0x168] ss:$16 sps:$4 sm:$0xff]  }
  0x8e   :  { %450 = vmatprep.subr.bf16.mxu1 %v1396_v19  ;;  %v1486_v19 = vld [vmem:[#allocation10 + $0xe4] ss:$8 sps:$4 sm:$0xff]   ;;  %v173_v38 = vsub.s32 0, %v1869_v37 }
  0x8f   :  { %v1551_v35 = vld [vmem:[#allocation11 + $0x28] sm:$0xff]  }
  0x90   :  { %931 = vmatpush1.bf16.msra.mxu0 %v1461_v39  ;;  %v1875_v39 = vld [vmem:[%s1914_s4] sm:$0xf] }
  0x91   :  { %451 = vmatpush1.bf16.msra.mxu1 %v1398_v20  ;;  %932 = vmatprep.subr.bf16.mxu0 %v1462_v40  ;;  %v1488_v20 = vld [vmem:[#allocation10 + $0xe0] ss:$8 sps:$4 sm:$0xff]   ;;  %v177_v40 = vsub.s32 1, %v1869_v37 }
  0x92   :  { %452 = vmatprep.subr.bf16.mxu1 %v1399_v21  ;;  %v1489_v21 = vld [vmem:[#allocation10 + $0xf4] ss:$8 sps:$4 sm:$0xff]  }
  0x94   :  { %933 = vmatpush1.bf16.msra.mxu0 %v1464_v41  ;;  %v174_v41 = vrot.slane %v1875_v39, %v173_v38 }
  0x95   :  { %453 = vmatpush1.bf16.msra.mxu1 %v1401_v22  ;;  %934 = vmatprep.subr.bf16.mxu0 %v1465_v42  ;;  %v1491_v22 = vld [vmem:[#allocation10 + $0xf0] ss:$8 sps:$4 sm:$0xff]   ;;  %v178_v42 = vrot.slane %v1875_v39, %v177_v40 }
  0x96   :  { %454 = vmatprep.subr.bf16.mxu1 %v1402_v23  ;;  %v1494_v23 = vld [vmem:[#allocation10 + $0x104] ss:$8 sps:$4 sm:$0xff]  }
  0x98   :  { %935 = vmatpush1.bf16.msra.mxu0 %v1467_v43 }
  0x99   :  { %455 = vmatpush1.bf16.msra.mxu1 %v1404_v27  ;;  %936 = vmatprep.subr.bf16.mxu0 %v1468_v44  ;;  %v1543_v27 = vld [vmem:[#allocation11 + $0x8] sm:$0xff]  }
  0x9a   :  { %456 = vmatprep.subr.bf16.mxu1 %v1405_v28  ;;  %v1544_v28 = vld [vmem:[#allocation11 + $0x50] sm:$0xff]  }
  0x9c   :  { %937 = vmatpush1.bf16.msra.mxu0 %v1470_v45 }
  0x9d   :  { %457 = vmatpush1.bf16.msra.mxu1 %v1407_v31  ;;  %938 = vmatprep.subr.bf16.mxu0 %v1471_v46  ;;  %v1547_v31 = vld [vmem:[#allocation11 + $0x18] sm:$0xff]  }
  0x9e   :  { %475 = vmatprep.subr.bf16.mxu1 %v1410_v32  ;;  %v1548_v32 = vld [vmem:[#allocation11 + $0x60] sm:$0xff]  }
  0xa0   :  { %939 = vmatpush1.bf16.msra.mxu0 %v1473_v47 }
  0xa1   :  { %940 = vmatprep.subr.bf16.mxu0 %v1474_v48 }
  0xa4   :  { %941 = vmatpush1.bf16.msra.mxu0 %v1476_v49 }
  0xa5   :  { %942 = vmatprep.subr.bf16.mxu0 %v1477_v50 }
  0xa8   :  { %943 = vmatpush1.bf16.msra.mxu0 %v1479_v51 }
  0xa9   :  { %944 = vmatprep.subr.bf16.mxu0 %v1480_v52  ;;  %v1492_v52 = vld [vmem:[#allocation10 + $0x100] ss:$8 sps:$4 sm:$0xff]  }
  0xac   :  { %945 = vmatpush1.bf16.msra.mxu0 %v1482_v53 }
  0xad   :  { %946 = vmatprep.subr.bf16.mxu0 %v1483_v54  ;;  %v1497_v54 = vld [vmem:[#allocation10 + $0x114] ss:$8 sps:$4 sm:$0xff]  }
  0xb0   :  { %947 = vmatpush1.bf16.msra.mxu0 %v1485_v55  ;;  %v1495_v55 = vld [vmem:[#allocation10 + $0x110] ss:$8 sps:$4 sm:$0xff]  }
  0xb1   :  { %948 = vmatprep.subr.bf16.mxu0 %v1486_v19  ;;  %v1530_v19 = vld [vmem:[#allocation10 + $0x1c4] ss:$8 sps:$4 sm:$0xff]  }
  0xb4   :  { %949 = vmatpush1.bf16.msra.mxu0 %v1488_v20 }
  0xb5   :  { %950 = vmatprep.subr.bf16.mxu0 %v1489_v21 }
  0xb8   :  { %951 = vmatpush1.bf16.msra.mxu0 %v1491_v22  ;;  %v1528_v22 = vld [vmem:[#allocation10 + $0x1c0] ss:$8 sps:$4 sm:$0xff]  }
  0xb9   :  { %961 = vmatprep.subr.bf16.mxu0 %v1494_v23  ;;  %v181_v23 = vsub.s32 2, %v1869_v37 }
  0xe1   :  { %v115_v57 = vpop.permute.xlu0 %114 }
  0xe2   :  { %v118_v58 = vsel %vm117_vm0, %v110_v56, %v115_v57  ;;  %v1500_v56 = vld [vmem:[#allocation10 + $0x124] ss:$8 sps:$4 sm:$0xff]   ;;  %v1498_v57 = vld [vmem:[#allocation10 + $0x120] ss:$8 sps:$4 sm:$0xff]  }
  0xe3   :  { %v119_v60 = vpack.c.bf16 %v118_v58, %v118_v58  ;;  %v1503_v58 = vld [vmem:[#allocation10 + $0x134] ss:$8 sps:$4 sm:$0xff]  }
  0xe5   :  { %467 = vmatmul.mubr.bf16.vlgmr.msra.gmra.mrb[0].mxu1 %v119_v60 }
  0xe6   :  { %476 = vmatpush1.bf16.msra.mxu1 %v1408_v59  ;;  %1249 = vmatprep.mubr.msk.bf16.mxu1 %vm117_vm0, %v1862_v13  ;;  %v1437_v13 = vld [vmem:[#allocation8 + $0x12c] ss:$16 sps:$4 sm:$0xff]   ;;  %v1501_v59 = vld [vmem:[#allocation10 + $0x130] ss:$8 sps:$4 sm:$0xff]  }
  0xe7   :  { %477 = vmatprep.subr.bf16.mxu1 %v1413_v61  ;;  %v1504_v61 = vld [vmem:[#allocation10 + $0x140] ss:$8 sps:$4 sm:$0xff]  }
  0xea   :  { %478 = vmatpush1.bf16.msra.mxu1 %v1411_v62  ;;  %v1509_v62 = vld [vmem:[#allocation10 + $0x154] ss:$8 sps:$4 sm:$0xff]  }
  0xeb   :  { %479 = vmatprep.subr.bf16.mxu1 %v1416_v63  ;;  %v1507_v63 = vld [vmem:[#allocation10 + $0x150] ss:$8 sps:$4 sm:$0xff]  }
  0xee   :  { %480 = vmatpush1.bf16.msra.mxu1 %v1414_v0  ;;  %v1512_v0 = vld [vmem:[#allocation10 + $0x164] ss:$8 sps:$4 sm:$0xff]  }
  0xef   :  { %481 = vmatprep.subr.bf16.mxu1 %v1419_v1  ;;  %v1510_v1 = vld [vmem:[#allocation10 + $0x160] ss:$8 sps:$4 sm:$0xff]  }
  0xf2   :  { %482 = vmatpush1.bf16.msra.mxu1 %v1417_v2  ;;  %v1515_v2 = vld [vmem:[#allocation10 + $0x174] ss:$8 sps:$4 sm:$0xff]  }
  0xf3   :  { %483 = vmatprep.subr.bf16.mxu1 %v1422_v3  ;;  %v1513_v3 = vld [vmem:[#allocation10 + $0x170] ss:$8 sps:$4 sm:$0xff]  }
  0xf6   :  { %484 = vmatpush1.bf16.msra.mxu1 %v1420_v4  ;;  %v1518_v4 = vld [vmem:[#allocation10 + $0x184] ss:$8 sps:$4 sm:$0xff]  }
  0xf7   :  { %485 = vmatprep.subr.bf16.mxu1 %v1425_v5  ;;  %v1516_v5 = vld [vmem:[#allocation10 + $0x180] ss:$8 sps:$4 sm:$0xff]  }
  0xfa   :  { %486 = vmatpush1.bf16.msra.mxu1 %v1423_v6  ;;  %v1521_v6 = vld [vmem:[#allocation10 + $0x194] ss:$8 sps:$4 sm:$0xff]  }
  0xfb   :  { %487 = vmatprep.subr.bf16.mxu1 %v1428_v7  ;;  %v1519_v7 = vld [vmem:[#allocation10 + $0x190] ss:$8 sps:$4 sm:$0xff]  }
  0xfe   :  { %488 = vmatpush1.bf16.msra.mxu1 %v1426_v8  ;;  %v185_v8 = vsub.s32 3, %v1869_v37 }
  0xff   :  { %489 = vmatprep.subr.bf16.mxu1 %v1431_v9  ;;  %v1524_v9 = vld [vmem:[#allocation10 + $0x1a4] ss:$8 sps:$4 sm:$0xff]  }
 0x102   :  { %490 = vmatpush1.bf16.msra.mxu1 %v1429_v10  ;;  %v186_v10 = vrot.slane %v1875_v39, %v185_v8 }
 0x103   :  { %491 = vmatprep.subr.bf16.mxu1 %v1434_v11  ;;  %v1522_v11 = vld [vmem:[#allocation10 + $0x1a0] ss:$8 sps:$4 sm:$0xff]  }
 0x106   :  { %492 = vmatpush1.bf16.msra.mxu1 %v1432_v12  ;;  %v1527_v12 = vld [vmem:[#allocation10 + $0x1b4] ss:$8 sps:$4 sm:$0xff]  }
 0x107   :  { %493 = vmatprep.subr.bf16.mxu1 %v1437_v13 }
 0x10a   :  { %494 = vmatpush1.bf16.msra.mxu1 %v1435_v14 }
 0x10b   :  { %495 = vmatprep.subr.bf16.mxu1 %v1440_v15 }
 0x10e   :  { %496 = vmatpush1.bf16.msra.mxu1 %v1438_v16 }
 0x10f   :  { %497 = vmatprep.subr.bf16.mxu1 %v1443_v17  ;;  %v1525_v17 = vld [vmem:[#allocation10 + $0x1b0] ss:$8 sps:$4 sm:$0xff]  }
 0x112   :  { %498 = vmatpush1.bf16.msra.mxu1 %v1441_v18 }
 0x113   :  { %1331 = vmatprep.subr.bf16.mxu1 %v1540_v24  ;;  %v1533_v24 = vld [vmem:[#allocation10 + $0x1d4] ss:$8 sps:$4 sm:$0xff]  }
 0x115   :  { %508 = vmatmul.mubr.bf16.vlgmr.msra.gmra.mrb[4].mxu1 %v119_v60  ;;  %v1506_v60 = vld [vmem:[#allocation10 + $0x144] ss:$8 sps:$4 sm:$0xff]  }
 0x116   :  { %1332 = vmatpush3.bf16.msra.mxu1 %v1541_v25  ;;  %v1531_v25 = vld [vmem:[#allocation10 + $0x1d0] ss:$8 sps:$4 sm:$0xff]  }
 0x117   :  { %1333 = vmatprep.subr.bf16.mxu1 %v1542_v26  ;;  %v182_v26 = vrot.slane %v1875_v39, %v181_v23  ;;  %v1555_v39 = vld [vmem:[#allocation11 + $0x38] sm:$0xff]  }
 0x11a   :  { %1334 = vmatpush3.bf16.msra.mxu1 %v1543_v27  ;;  %v1536_v27 = vld [vmem:[#allocation10 + $0x1e4] ss:$8 sps:$4 sm:$0xff]  }
 0x11b   :  { %1335 = vmatprep.subr.bf16.mxu1 %v1544_v28  ;;  %v1534_v28 = vld [vmem:[#allocation10 + $0x1e0] ss:$8 sps:$4 sm:$0xff]  }
 0x11e   :  { %1336 = vmatpush3.bf16.msra.mxu1 %v1545_v29 }
 0x11f   :  { %1337 = vmatprep.subr.bf16.mxu1 %v1546_v30  ;;  %v1539_v30 = vld [vmem:[#allocation10 + $0x1f4] ss:$8 sps:$4 sm:$0xff]  }
 0x122   :  { %1338 = vmatpush3.bf16.msra.mxu1 %v1547_v31  ;;  %v1537_v31 = vld [vmem:[#allocation10 + $0x1f0] ss:$8 sps:$4 sm:$0xff]  }
 0x123   :  { %1339 = vmatprep.subr.bf16.mxu1 %v1548_v32 }
 0x126   :  { %1340 = vmatpush3.bf16.msra.mxu1 %v1549_v33 }
 0x127   :  { %1341 = vmatprep.subr.bf16.mxu1 %v1550_v34  ;;  %v1552_v34 = vld [vmem:[#allocation11 + $0x70] sm:$0xff]  }
 0x12a   :  { %1342 = vmatpush3.bf16.msra.mxu1 %v1551_v35  ;;  %v1553_v35 = vld [vmem:[#allocation11 + $0x30] sm:$0xff]  }
 0x12b   :  { %1343 = vmatprep.subr.bf16.mxu1 %v1552_v34 }
 0x12e   :  { %1344 = vmatpush3.bf16.msra.mxu1 %v1553_v35 }
 0x12f   :  { %1345 = vmatprep.subr.bf16.mxu1 %v1554_v36 }
 0x132   :  { %1346 = vmatpush3.bf16.msra.mxu1 %v1555_v39 }
 0x1b8   :  { %v468_v43 = vpop.f32.mrb[0].mxu1 }
 0x1b9   :  { %v469_v44 = vadd.f32 %v468_v43, %v174_v41  ;;  %v470_v45 = vpop.f32.mrb[1].mxu1  ;;  %v588_v41 = vld [vmem:[%s1916_s6] sm:$0x3] }
 0x1ba   :  { %v471_v46 = vadd.f32 %v470_v45, %v178_v42  ;;  %v472_v47 = vpop.f32.mrb[2].mxu1  ;;  %v593_v42 = vrot.slane %v588_v41, %v173_v38  ;;  %v597_v43 = vrot.slane %v588_v41, %v177_v40  ;;  %v1314_v38 = vld [vmem:[%s1918_s8] ss:$0 sm:$0xff] }
 0x1bb   :  { %v516_v48 = vmax.f32 %v469_v44, 0.0  ;;  %v473_v49 = vpop.f32.mrb[3].mxu1 }
 0x1bc   :  { %v517_v50 = vmax.f32 %v471_v46, 0.0 }
 0x1bd   :  { %v520_v53 = vpack.c.bf16 %v516_v48, %v516_v48 }
 0x1be   :  { %v521_v51 = vpack.c.bf16 %v517_v50, %v517_v50 }
 0x1c0   :  { %952 = vmatprep.mubr.bf16.mxu0 %v521_v51 }
 0x1c1   :  { %953 = vmatmul.mubr.bf16.vlgmr.msra.gmra.mrb[0].mxu0 %v520_v53 }
 0x1c2   :  { %962 = vmatpush1.bf16.msra.mxu0 %v1492_v52 }
 0x1c3   :  { %963 = vmatprep.subr.bf16.mxu0 %v1497_v54 }
 0x1c6   :  { %964 = vmatpush1.bf16.msra.mxu0 %v1495_v55 }
 0x1c7   :  { %965 = vmatprep.subr.bf16.mxu0 %v1500_v56 }
 0x1ca   :  { %966 = vmatpush1.bf16.msra.mxu0 %v1498_v57 }
 0x1cb   :  { %967 = vmatprep.subr.bf16.mxu0 %v1503_v58 }
 0x1ce   :  { %968 = vmatpush1.bf16.msra.mxu0 %v1501_v59 }
 0x1cf   :  { %969 = vmatprep.subr.bf16.mxu0 %v1506_v60 }
 0x1d2   :  { %970 = vmatpush1.bf16.msra.mxu0 %v1504_v61 }
 0x1d3   :  { %971 = vmatprep.subr.bf16.mxu0 %v1509_v62 }
 0x1d6   :  { %972 = vmatpush1.bf16.msra.mxu0 %v1507_v63 }
 0x1d7   :  { %973 = vmatprep.subr.bf16.mxu0 %v1512_v0 }
 0x1da   :  { %974 = vmatpush1.bf16.msra.mxu0 %v1510_v1 }
 0x1db   :  { %975 = vmatprep.subr.bf16.mxu0 %v1515_v2 }
 0x1de   :  { %976 = vmatpush1.bf16.msra.mxu0 %v1513_v3 }
 0x1df   :  { %977 = vmatprep.subr.bf16.mxu0 %v1518_v4 }
 0x1e2   :  { %978 = vmatpush1.bf16.msra.mxu0 %v1516_v5 }
 0x1e3   :  { %979 = vmatprep.subr.bf16.mxu0 %v1521_v6 }
 0x1e6   :  { %980 = vmatpush1.bf16.msra.mxu0 %v1519_v7 }
 0x1e7   :  { %981 = vmatprep.subr.bf16.mxu0 %v1524_v9 }
 0x1e8   :  { %v509_v13 = vpop.f32.mrb[4].mxu1 }
 0x1e9   :  { %v511_v14 = vpop.f32.mrb[5].mxu1  ;;  %v510_v29 = vadd.f32 %v509_v13, %v182_v26 }
 0x1ea   :  { %v512_v15 = vadd.f32 %v511_v14, %v186_v10  ;;  %v513_v16 = vpop.f32.mrb[6].mxu1  ;;  %982 = vmatpush1.bf16.msra.mxu0 %v1522_v11 }
 0x1eb   :  { %v514_v18 = vpop.f32.mrb[7].mxu1  ;;  %983 = vmatprep.subr.bf16.mxu0 %v1527_v12  ;;  %v518_v32 = vmax.f32 %v510_v29, 0.0 }
 0x1ec   :  { %v519_v20 = vmax.f32 %v512_v15, 0.0 }
 0x1ed   :  { %v522_v33 = vpack.c.bf16 %v518_v32, %v518_v32 }
 0x1ee   :  { %v523_v21 = vpack.c.bf16 %v519_v20, %v519_v20  ;;  %984 = vmatpush1.bf16.msra.mxu0 %v1525_v17 }
 0x1ef   :  { %985 = vmatprep.subr.bf16.mxu0 %v1530_v19 }
 0x1f0   :  { %993 = vmatprep.mubr.bf16.mxu0 %v523_v21 }
 0x1f2   :  { %986 = vmatpush1.bf16.msra.mxu0 %v1528_v22 }
 0x1f3   :  { %987 = vmatprep.subr.bf16.mxu0 %v1533_v24 }
 0x1f6   :  { %988 = vmatpush1.bf16.msra.mxu0 %v1531_v25 }
 0x1f7   :  { %989 = vmatprep.subr.bf16.mxu0 %v1536_v27 }
 0x1fa   :  { %990 = vmatpush1.bf16.msra.mxu0 %v1534_v28 }
 0x1fb   :  { %991 = vmatprep.subr.bf16.mxu0 %v1539_v30 }
 0x1fe   :  { %992 = vmatpush1.bf16.msra.mxu0 %v1537_v31 }
 0x201   :  { %994 = vmatmul.mubr.bf16.vlgmr.msra.gmra.mrb[0].mxu0 %v522_v33 }
 0x2d4   :  { %v995_v44 = vpop.f32.mrb[0].mxu0 }
 0x2d5   :  { %v1353_v45 = vadd.f32 %v995_v44, %v593_v42  ;;  %v997_v46 = vpop.f32.mrb[1].mxu0 }
 0x2d6   :  { %v1354_v47 = vadd.f32 %v997_v46, %v597_v43  ;;  %v999_v48 = vpop.f32.mrb[2].mxu0 }
 0x2d7   :  { %v1002_v49 = vmax.f32 %v1353_v45, 0.0  ;;  %v1000_v50 = vpop.f32.mrb[3].mxu0 }
 0x2d8   :  { %v1003_v51 = vmax.f32 %v1354_v47, 0.0 }
 0x2d9   :  { %v1004_v53 = vpack.c.bf16 %v1002_v49, %v1002_v49 }
 0x2da   :  { %v1005_v52 = vpack.c.bf16 %v1003_v51, %v1003_v51 }
 0x2dc   :  { %1173 = vmatprep.mubr.bf16.mxu1 %v1005_v52 }
 0x2dd   :  { %1174 = vmatmul.mubr.bf16.vlgmr.msra.gmra.mrb[8].mxu1 %v1004_v53 }
 0x3b0   :  { %v1347_v54 = vpop.f32.mrb[8].mxu1 }
 0x3b1   :  { %v1348_v55 = vpop.f32.mrb[9].mxu1 }
 0x3b2   :  { %v1349_v37 = vadd.f32 %v1348_v55, %v1347_v54  ;;  %v1350_v40 = vpop.f32.mrb[10].mxu1 }
 0x3b3   :  { %v1351_v56 = vpop.f32.mrb[11].mxu1 }
 0x3b4   :  { %v1176_v57 = vadd.f32 %v1349_v37, %v1314_v38 }
 0x3b6   :  { %1181 = vst [vmem:[#allocation13] sm:$0xff] %v1176_v57 }
 0x3b7   :  { %1699 = shalt.err (!%p1696_p10)
}
 0x3b8   :  { %s1700_s8 = scalar_lea.hbm %s1919_s9, 128 }
 0x3b9   :  { %p1701_p11 = scmp.ne.s32.totalorder %s1919_s9, %s1700_s8  ;;  %p1704_p12 = scmp.lt.u32.totalorder %s1700_s8, %s1919_s9 }
 0x3bb   :  { %p1706_p13 = pnand %p1704_p12, %p1701_p11 }
 0x3bd   :  { %1709 = shalt.err (!%p1706_p13)
}
 0x3be   :  { %1191 = dma.vmem_to_hbm [thread:$0]  %s1189_s21, 128, %s1919_s9, [#allocation4]  }
 0x3bf   :  { %1718 = dma.done.wait [#allocation4], 128  }
 0x3c0   :  { %1719 = vsyncadd [#allocation4], 4294967168 }
 0x3c1   :  { %1195 = vsyncpa [#allocation3], 1 }
 0x3c2   :  { %1196 = vsyncpa [#allocation6], 1 }
 0x3c3   :  { %1197 = vsyncpa [#allocation9], 1 }
 0x3c4   :  { %1198 = vsyncpa [#allocation12], 1 }
 0x3c5   :  { %1199 = vsyncpa [#allocation4], 1 }

</bundles_post_ra>
